<compile_context>
chip_gen: v5e
topology: v5e:2x2
jax: 0.10.0
libtpu: 0.0.40
codegen_flags: <defaults>
</compile_context>

<pallas_src>
import jax
import jax.numpy as jnp
from jax.experimental import pallas as pl
from jax.experimental.pallas import tpu as pltpu  # noqa: F401  (TPU backend)

F_IN = 4     # Linear(4, 4) feature width
F_PAD = 128  # lane-dense pad for the prepared weight block


def prepare_params(w1, w2, w3, buffer, *, f_pad=F_PAD):
    """One-time (init) parameter prep — NOT in the per-call forward path.

    y = ((x @ W1.T) @ W2.T) @ W3.T + buf  ==  x @ (W3 @ W2 @ W1).T + buf

    Returns a single lane-dense (f_pad, f_pad) f32 block:
      rows [0:F)  -> fused, pre-transposed weight (laid out for x @ W)
      row   F     -> the registered buffer, used as a bias row inside the kernel
    """
    f = w1.shape[0]
    w_fused_t = (w3 @ w2 @ w1).T  # (F, F), host-side fusion + pre-transpose
    w_aug = jnp.zeros((f_pad, f_pad), jnp.float32)
    w_aug = w_aug.at[:f, :f].set(w_fused_t.astype(jnp.float32))
    w_aug = w_aug.at[f, :f].set(buffer.astype(jnp.float32))
    return w_aug


def _net_kernel(x_ref, w_ref, o_ref):
    f = x_ref.shape[-1]
    w = w_ref[:f, :f]        # static slice of the prepared weight (zero-cost view)
    b = w_ref[f:f + 1, :f]   # bias row = registered buffer; broadcasts over batch
    o_ref[...] = (
        jnp.dot(x_ref[...], w, preferred_element_type=jnp.float32) + b
    )


def net_forward(x, w_aug):
    """Per-call forward: single-step pallas_call, one matmul, no wrapper ops.

    x:     (B, 4) f32 activations (used as-is; no per-call pad/slice)
    w_aug: (128, 128) f32 block produced once by `prepare_params`
    """
    B, f = x.shape
    full = lambda shape: pl.BlockSpec(shape, lambda: (0,) * len(shape))
    return pl.pallas_call(
        _net_kernel,
        out_shape=jax.ShapeDtypeStruct((B, f), jnp.float32),
        in_specs=[
            full((B, f)),        # activations, full-array block
            full(w_aug.shape),   # fused weight + bias row, full-array block
        ],
        out_specs=full((B, f)),
    )(x, w_aug)


if __name__ == "__main__":
    key = jax.random.PRNGKey(0)
    k_x, k_w1, k_w2, k_w3 = jax.random.split(key, 4)

    B, F = 8, F_IN

    x = jax.random.normal(k_x, (B, F), dtype=jnp.float32)
    # PyTorch-like uniform(-1/sqrt(4), 1/sqrt(4)) init, deterministic.
    bound = 0.5
    w1 = jax.random.uniform(k_w1, (F, F), jnp.float32, -bound, bound)
    w2 = jax.random.uniform(k_w2, (F, F), jnp.float32, -bound, bound)
    w3 = jax.random.uniform(k_w3, (F, F), jnp.float32, -bound, bound)
    buffer = jnp.zeros((F,), dtype=jnp.float32)  # register_buffer('buffer', zeros(4))

    # One-time parameter prep (hoisted out of the forward path).
    w_aug = jax.block_until_ready(prepare_params(w1, w2, w3, buffer))

    fwd = jax.jit(net_forward)
    out = jax.block_until_ready(fwd(x, w_aug))

    # Pure-JAX reference (exactly the PyTorch forward: unfused chain + buffer).
    ref = ((x @ w1.T) @ w2.T) @ w3.T + buffer
    assert out.shape == (B, F)
    assert jnp.allclose(out, ref, atol=1e-5, rtol=1e-5), "mismatch vs reference"

    print("KERNEL_OK")
</pallas_src>

<mosaic_0001>
module attributes {stable_mosaic.version = 11 : i64} {
  func.func @_net_kernel(%arg0: memref<8x4xf32, #tpu.memory_space<vmem>>, %arg1: memref<128x128xf32, #tpu.memory_space<vmem>>, %arg2: memref<8x4xf32, #tpu.memory_space<vmem>>) attributes {dimension_semantics = [], scalar_prefetch = 0 : i64, scratch_operands = 0 : i64, tpu.core_type = #tpu.core_type<tc>} {
    %c0 = arith.constant 0 : index
    %c0_0 = arith.constant 0 : index
    %0 = vector.load %arg1[%c0, %c0_0] : memref<128x128xf32, #tpu.memory_space<vmem>>, vector<4x4xf32>
    %c4 = arith.constant 4 : index
    %c0_1 = arith.constant 0 : index
    %1 = vector.load %arg1[%c4, %c0_1] : memref<128x128xf32, #tpu.memory_space<vmem>>, vector<1x4xf32>
    %c0_2 = arith.constant 0 : index
    %c0_3 = arith.constant 0 : index
    %2 = vector.load %arg0[%c0_2, %c0_3] : memref<8x4xf32, #tpu.memory_space<vmem>>, vector<8x4xf32>
    %cst = arith.constant dense<0.000000e+00> : vector<8x4xf32>
    %3 = tpu.matmul %2, %0, %cst {dimension_numbers = #tpu.dot_dimension_numbers<[1], [0], [0], [1], [0, 0, 1, 1], [], []>} : vector<8x4xf32>, vector<4x4xf32>, vector<8x4xf32> -> vector<8x4xf32>
    %4 = vector.broadcast %1 : vector<1x4xf32> to vector<8x4xf32>
    %5 = arith.addf %3, %4 : vector<8x4xf32>
    %c0_4 = arith.constant 0 : index
    %c0_5 = arith.constant 0 : index
    %6 = vector.load %arg2[%c0_4, %c0_5] : memref<8x4xf32, #tpu.memory_space<vmem>>, vector<8x4xf32>
    tpu.vector_store %arg2[%c0_4, %c0_5], %5 {strides = array<i32>} : memref<8x4xf32, #tpu.memory_space<vmem>>, vector<8x4xf32>,
    return
  }
}

</mosaic_0001>

<bundles_post_ra>
// kernel: net_forward.1
= control target key start
LH: loop header
LB: loop body
LE: loop exit
PB: predicated region body
PF: predicated region fallthrough
CT: control target
= control target key end

     0   :  { %7 = vsyncpa [#allocation3], 0  ;;  %s97_s12 = smov [#allocation2]   ;;  %s98_s14 = smov 128   ;;  %s124_s0 = inlined_call_operand.vmem [shape: f32[8,4], index: 0, kind: input, shape index: {}]   ;;  %s125_s1 = inlined_call_operand.hbm [shape: f32[128,128], index: 1, kind: input, shape index: {}]   ;;  %s126_s2 = inlined_call_operand.vmem [shape: f32[8,4], index: 2, kind: output, shape index: {}]  }
   0x1   :  { %s14_s11 = sshll.u32 %s125_s1, 4  ;;  %s16_s13 = sshll.u32 %s97_s12, 4  ;;  %s15_s11 = int_to_ptr.hbm [resolvable:$true] %s14_s11  ;;  %s17_s13 = int_to_ptr.vmem [resolvable:$true] %s16_s13 }
   0x2   :  { %s99_s15 = smov 8  }
   0x3   :  { %22 = dma.hbm_to_vmem [thread:$0]  %s15_s11, 2048, %s17_s13, [#allocation3], %s98_s14, %s98_s14, %s99_s15  }
   0x4   :  { %95 = dma.done.wait [#allocation3], 2048  }
   0x5   :  { %96 = vsyncadd [#allocation3], 4294965248  ;;  %vm35_vm0 = vcmask 1043456   ;;  %vm31_vm1 = vcmask 31744   ;;  %v27_v0 = vld [vmem:[#allocation2] sm:$0xf] }
   0x6   :  { %v29_v1 = vld [vmem:[%s124_s0] sm:$0xff]  ;;  %65 = vmatpush.msk.msra.mxu0 %vm35_vm0, %v27_v0 }
   0x7   :  { %66 = vmatmul.msk.f32.vlgmr.msra.gmra.mxu0 %vm31_vm1, %v29_v1  ;;  %v70_v2 = vld [vmem:[#allocation2 + $0x4] ss:$0 sm:$0xff] }
  0x84   :  { %v56_v3 = vpop.f32.mrf.mxu0 }
  0x85   :  { %v57_v4 = vadd.f32 %v70_v2, %v56_v3 }
  0x87   :  { %59 = vst.msk [vmem:[%s126_s2] sm:$0xff] %vm31_vm1, %v57_v4 }
  0x88   :  { %64 = vsyncpa [#allocation3], 1 }

</bundles_post_ra>
